<compile_context>
chip_gen: v5e
topology: v5e:2x2
jax: 0.10.0
libtpu: 0.0.40
codegen_flags: <defaults>
</compile_context>

<pallas_src>
import functools

import jax
import jax.numpy as jnp
from jax.experimental import pallas as pl
from jax.experimental.pallas import tpu as pltpu


def _scale_kernel(scale_ref, x_ref, o_ref):
    # Multiply in fp32 (the parameter's dtype), cast on store. The kernel is
    # HBM-bound, so the upcast is free VPU filler.
    s = scale_ref[0]
    o_ref[...] = (x_ref[...].astype(jnp.float32) * s).astype(o_ref.dtype)


_SMALL_BYTES = 1 << 20          # below this: fused XLA multiply (launch overhead dominates)
_SPLIT_BYTES = 2 << 20          # above this: force >= 2 grid blocks (pipelining / 2 TCs on v7x)
_LANE_CANDIDATES = (2048, 1024, 512, 256, 128)


@functools.lru_cache(maxsize=1)
def _chip_defaults():
    """Per-generation (tile_bytes, vmem_limit_bytes or None)."""
    try:
        kind = jax.devices()[0].device_kind.lower()
    except Exception:  # pragma: no cover - defensive
        kind = ""
    if "v7" in kind:
        # 2 arrays x 2 buffers x 8 MiB = 32 MiB > 32 MiB default scoped limit,
        # so raise it explicitly (v7x physical VMEM is 64 MiB / TC).
        return 8 << 20, 48 << 20
    if "v6" in kind:
        # 16 MiB resident fits the 32 MiB default; set the limit for headroom.
        return 4 << 20, 64 << 20
    # v5e (16 MiB default scoped VMEM) and unknown chips: stay conservative.
    return 2 << 20, None


def scale_forward(x: jax.Array, scale, *, tile_bytes: int | None = None,
                  small_bytes: int = _SMALL_BYTES,
                  split_bytes: int = _SPLIT_BYTES,
                  donate: bool = False) -> jax.Array:
    """Compute x * scale with a tiled, pipelined Pallas TPU kernel."""
    orig_shape = x.shape
    orig_dtype = x.dtype
    total = int(x.size)
    itemsize = jnp.dtype(orig_dtype).itemsize
    scale_f32 = jnp.asarray(scale, dtype=jnp.float32)

    # --- Fast paths: wrapper-side HBM passes cost more than the op itself. ---
    #  * empty / tiny tensors: per-call + per-step overhead dominates.
    #  * ragged totals (not a multiple of 128): padding + slicing would triple
    #    the HBM traffic of this mem-bound op.
    if total == 0 or total * itemsize < small_bytes or total % 128 != 0:
        return (x.astype(jnp.float32) * scale_f32).astype(orig_dtype)

    chip_tile, vmem_limit = _chip_defaults()
    if tile_bytes is None:
        tile_bytes = chip_tile

    # Sublane alignment for packed narrow dtypes (f32: 8, bf16: 16, int8/fp8: 32).
    sub = {4: 8, 2: 16, 1: 32}.get(itemsize, 8)

    # --- Lane-dense 2D view ---
    last = orig_shape[-1] if len(orig_shape) else 1
    if last >= 128 and last % 128 == 0 and last * itemsize * sub <= tile_bytes:
        # Layout-preserving: keep the original lane dim, collapse leading dims.
        lanes = last
    else:
        # Lane-sparse (or huge) last dim: widest 128-multiple dividing the
        # total (128 always divides here since total % 128 == 0).
        lanes = next(c for c in _LANE_CANDIDATES if total % c == 0)
    rows = total // lanes
    x2d = x.reshape(rows, lanes)

    row_bytes = lanes * itemsize
    tm = max(sub, (tile_bytes // row_bytes) // sub * sub)
    total_bytes = total * itemsize
    if tm >= rows:
        if total_bytes >= split_bytes and rows >= 2 * sub:
            # Keep >= 2 blocks: overlaps in/out DMA with compute and feeds both
            # TensorCores on v7x via the "parallel" grid axis.
            half = -(-rows // 2)
            tm = -(-half // sub) * sub
        else:
            tm = rows                      # single block (full dim is legal)

    grid = (pl.cdiv(rows, tm),)

    cp_kwargs = dict(dimension_semantics=("parallel",))
    if vmem_limit is not None:
        cp_kwargs["vmem_limit_bytes"] = vmem_limit

    out2d = pl.pallas_call(
        _scale_kernel,
        out_shape=jax.ShapeDtypeStruct((rows, lanes), orig_dtype),
        grid=grid,
        in_specs=[
            pl.BlockSpec(memory_space=pltpu.SMEM),         # fp32 scalar parameter
            pl.BlockSpec((tm, lanes), lambda i: (i, 0)),   # streamed input tile
        ],
        out_specs=pl.BlockSpec((tm, lanes), lambda i: (i, 0)),
        compiler_params=pltpu.CompilerParams(**cp_kwargs),
        input_output_aliases={1: 0} if donate else {},
    )(scale_f32.reshape(1), x2d)

    return out2d.reshape(orig_shape)


if __name__ == "__main__":
    key = jax.random.PRNGKey(0)
    init_value = 1.0                      # Scale.__init__ default
    scale_param = jnp.float32(init_value)

    # 1) Module-default usage at a small shape; force the Pallas path so the
    #    kernel itself is exercised (small tensors normally take the XLA path).
    x = jax.random.normal(key, (2, 4, 16, 16), dtype=jnp.float32)
    out = jax.block_until_ready(scale_forward(x, scale_param, small_bytes=0))
    assert out.shape == x.shape and out.dtype == x.dtype
    assert jnp.allclose(out, x * scale_param, atol=1e-6, rtol=1e-6)

    # 2) Layout-preserving path (last dim is a multiple of 128), multi-block grid.
    k2 = jax.random.PRNGKey(1)
    x2 = jax.random.normal(k2, (2, 4, 8, 256), dtype=jnp.float32)
    s2 = jnp.float32(-0.37)
    out2 = jax.block_until_ready(
        scale_forward(x2, s2, small_bytes=0, tile_bytes=32 * 1024))
    assert jnp.allclose(out2, x2 * s2, atol=1e-6, rtol=1e-6)

    # 3) Partial last row-block (rows not a multiple of the row tile).
    k3 = jax.random.PRNGKey(2)
    x3 = jax.random.normal(k3, (9, 8, 256), dtype=jnp.float32)
    s3 = jnp.float32(2.5)
    out3 = jax.block_until_ready(
        scale_forward(x3, s3, small_bytes=0, tile_bytes=32 * 1024))
    assert jnp.allclose(out3, x3 * s3, atol=1e-6, rtol=1e-6)

    # 4) Ragged total (not a multiple of 128) -> fused XLA fallback, no padding.
    k4 = jax.random.PRNGKey(3)
    x4 = jax.random.normal(k4, (3, 5, 7), dtype=jnp.float32)
    out4 = jax.block_until_ready(scale_forward(x4, jnp.float32(2.5)))
    assert out4.shape == x4.shape
    assert jnp.allclose(out4, x4 * 2.5, atol=1e-6, rtol=1e-6)

    # 5) bf16 activations: multiply in fp32 (parameter precision), cast on store.
    x5 = jax.random.normal(key, (2, 4, 16, 16), dtype=jnp.bfloat16)
    s5 = jnp.float32(1.3)
    out5 = jax.block_until_ready(scale_forward(x5, s5, small_bytes=0))
    ref5 = (x5.astype(jnp.float32) * s5).astype(jnp.bfloat16)
    assert out5.dtype == jnp.bfloat16
    assert jnp.allclose(out5.astype(jnp.float32), ref5.astype(jnp.float32),
                        atol=1e-2, rtol=1e-2)

    # 6) Forced >=2-block split path (what mid/large arrays hit on v7x).
    k6 = jax.random.PRNGKey(4)
    x6 = jax.random.normal(k6, (2, 64, 256), dtype=jnp.float32)
    out6 = jax.block_until_ready(
        scale_forward(x6, jnp.float32(0.5), small_bytes=0, split_bytes=0))
    assert jnp.allclose(out6, x6 * 0.5, atol=1e-6, rtol=1e-6)

    print("KERNEL_OK")
</pallas_src>

<mosaic_0001>
module attributes {stable_mosaic.version = 11 : i64} {
  func.func @_scale_kernel(%arg0: i32, %arg1: memref<1xf32, #tpu.memory_space<smem>>, %arg2: memref<1x2048xf32, #tpu.memory_space<vmem>>, %arg3: memref<1x2048xf32, #tpu.memory_space<vmem>>) attributes {dimension_semantics = [#tpu.dimension_semantics<parallel>], iteration_bounds = array<i64: 1>, scalar_prefetch = 0 : i64, scratch_operands = 0 : i64, tpu.core_type = #tpu.core_type<tc>, window_params = [{transform_indices = @transform_0, window_bounds = array<i64: 1>}, {transform_indices = @transform_1, window_bounds = array<i64: 1, 2048>}, {transform_indices = @transform_2, window_bounds = array<i64: 1, 2048>}]} {
    %c0 = arith.constant 0 : index
    %0 = memref.load %arg1[%c0] : memref<1xf32, #tpu.memory_space<smem>>
    %c0_0 = arith.constant 0 : index
    %c0_1 = arith.constant 0 : index
    %1 = vector.load %arg2[%c0_0, %c0_1] : memref<1x2048xf32, #tpu.memory_space<vmem>>, vector<1x2048xf32>
    %2 = vector.broadcast %0 : f32 to vector<1x2048xf32>
    %3 = arith.mulf %1, %2 : vector<1x2048xf32>
    %c0_2 = arith.constant 0 : index
    %c0_3 = arith.constant 0 : index
    %4 = vector.load %arg3[%c0_2, %c0_3] : memref<1x2048xf32, #tpu.memory_space<vmem>>, vector<1x2048xf32>
    tpu.vector_store %arg3[%c0_2, %c0_3], %3 {strides = array<i32>} : memref<1x2048xf32, #tpu.memory_space<vmem>>, vector<1x2048xf32>,
    return
  }
  func.func @transform_0(%arg0: i32) -> i32 {
    %c0_i32 = arith.constant 0 : i32
    %c0_i32_0 = arith.constant 0 : i32
    return %c0_i32 : i32
  }
  func.func @transform_1(%arg0: i32) -> (i32, i32) {
    %c0_i32 = arith.constant 0 : i32
    %c0_i32_0 = arith.constant 0 : i32
    return %arg0, %c0_i32 : i32, i32
  }
  func.func @transform_2(%arg0: i32) -> (i32, i32) {
    %c0_i32 = arith.constant 0 : i32
    %c0_i32_0 = arith.constant 0 : i32
    return %arg0, %c0_i32 : i32, i32
  }
}

</mosaic_0001>

<bundles_post_ra>
// kernel: tpu_custom_call.1
= control target key start
LH: loop header
LB: loop body
LE: loop exit
PB: predicated region body
PF: predicated region fallthrough
CT: control target
= control target key end

     0   :  { %8 = vsyncpa [#allocation4], 0  ;;  %s132_s0 = inlined_call_operand.<no memory space> [shape: f32[1], index: 0, kind: input, shape index: {}]   ;;  %s133_s1 = inlined_call_operand.hbm [shape: f32[1,2048], index: 1, kind: input, shape index: {}]   ;;  %s134_s2 = inlined_call_operand.hbm [shape: f32[1,2048], index: 2, kind: output, shape index: {}]  }
   0x1   :  { %9 = vsyncpa [#allocation5], 0  ;;  %s17_s11 = sshll.u32 %s133_s1, 4  ;;  %s106_s12 = smov [#allocation3]   ;;  %s18_s11 = int_to_ptr.hbm [resolvable:$true] %s17_s11 }
   0x2   :  { %s19_s13 = sshll.u32 %s106_s12, 4  ;;  %s20_s13 = int_to_ptr.vmem [resolvable:$true] %s19_s13 }
   0x3   :  { %22 = dma.hbm_to_vmem [thread:$0]  %s18_s11, 256, %s20_s13, [#allocation4]  }
   0x4   :  { %102 = dma.done.wait [#allocation4], 256  }
   0x5   :  { %103 = vsyncadd [#allocation4], 4294967040  ;;  %v30_v0 = vstv %s132_s0  ;;  %s107_s16 = smov [#allocation6]   ;;  %s42_s20 = sshll.u32 %s134_s2, 4  ;;  %v28_v1 = vld [vmem:[#allocation3] sm:$0xff]  ;;  %v29_v2 = vld [vmem:[#allocation3 + $0x8] sm:$0xff]  ;;  %s43_s20 = int_to_ptr.hbm [resolvable:$true] %s42_s20 }
   0x6   :  { %s40_s17 = sshll.u32 %s107_s16, 4  ;;  %v31_v3 = vmul.f32 %v30_v0, %v28_v1  ;;  %v32_v4 = vmul.f32 %v30_v0, %v29_v2  ;;  %s41_s17 = int_to_ptr.vmem [resolvable:$true] %s40_s17 }
   0x8   :  { %33 = vst [vmem:[#allocation6] sm:$0xff] %v31_v3 }
   0x9   :  { %34 = vst [vmem:[#allocation6 + $0x8] sm:$0xff] %v32_v4 }
   0xa   :  { %45 = dma.vmem_to_hbm [thread:$0]  %s41_s17, 256, %s43_s20, [#allocation5]  }
   0xb   :  { %104 = dma.done.wait [#allocation5], 256  }
   0xc   :  { %105 = vsyncadd [#allocation5], 4294967040 }
   0xd   :  { %50 = vsyncpa [#allocation4], 1 }
   0xe   :  { %51 = vsyncpa [#allocation5], 1 }

</bundles_post_ra>
